<compile_context>
chip_gen: v5e
topology: v5e:2x2
jax: 0.10.0
libtpu: 0.0.40
codegen_flags: <defaults>
</compile_context>

<pallas_src>
import itertools
from functools import partial

import numpy as np
import jax
import jax.numpy as jnp
from jax.experimental import pallas as pl
from jax.experimental.pallas import tpu as pltpu

try:  # optional host-side Hungarian solver
    from scipy.optimize import linear_sum_assignment as _scipy_lsa
except Exception:  # pragma: no cover
    _scipy_lsa = None

# ----------------------- module "__init__" parameters ------------------------
NUM_CLASSES = 4            # K; logits have K+1 classes (last one = no-object)
EOS_COEF = 0.1             # weight of the no-object class in cross-entropy
COST_CLASS = 2.0           # HungarianMatcher weights (Mask2Former defaults)
COST_MASK = 5.0
COST_DICE = 5.0
LOSSES = ("labels", "masks")
OVERSAMPLE_RATIO = 3.0           # unused (dense point sampling, see TODO)
IMPORTANCE_SAMPLE_RATIO = 0.75   # unused (dense point sampling, see TODO)

_NEG_PAD = -1e9   # pred padding value: exp underflows to exactly 0 contribution


# --------------------------- sizing helpers ----------------------------------
def _vmem_limit_bytes():
    """Generation-aware scoped-VMEM limit: ~half physical capacity, capped at 64 MiB
    (=> 32 MiB on v7x's 64 MiB VMEM, 64 MiB on v5e/v6e's 128 MiB)."""
    cap = 128 << 20
    try:
        cap = int(getattr(pltpu.get_tpu_info(), "vmem_capacity_bytes", cap))
    except Exception:
        pass
    return int(min(max(cap // 2, 16 << 20), 64 << 20))


def _plan_point_tiling(P, rows_bf16, budget_bytes, cap=32768):
    """Pick the point tile TP (multiple of 128, <= cap) so the double-buffered bf16
    point blocks (rows_bf16 rows) fit in budget_bytes, and pad P up to a multiple
    of TP.  Guarantees (8,128)-aligned, pipelined DMA even when P % 128 != 0."""
    p128 = -(-P // 128) * 128
    max_cols = budget_bytes // (2 * 2 * max(rows_bf16, 1))   # 2 buffers x 2 B/elt
    tp = max(128, min(cap, (max_cols // 128) * 128))
    tp = min(tp, p128)
    p_pad = -(-p128 // tp) * tp
    return tp, p_pad


# --------------------------- Pallas kernels ----------------------------------
def _cost_kernel(logits_ref, predm_ref, tgt_ref, oh_ref, tsum_ref,
                 cost_ref, bce_ref, dice_ref,
                 acc_xt, acc_st, acc_sp, *, inv_points, num_tgt):
    """Per-layer matcher cost matrix plus per-pair BCE-mean / dice matrices,
    accumulated over point tiles.  Rows = B*Q predictions, cols = B*Tmax targets."""
    k = pl.program_id(1)

    @pl.when(k == 0)
    def _():
        acc_xt[...] = jnp.zeros_like(acc_xt)
        acc_st[...] = jnp.zeros_like(acc_st)
        acc_sp[...] = jnp.zeros_like(acc_sp)

    x = predm_ref[0].astype(jnp.float32)         # (BQ, TP) mask logits (points)
    tt = tgt_ref[...].astype(jnp.float32)        # (TT+1, TP) = [binary targets ; ones]
    dn = (((1,), (1,)), ((), ()))                # "qp,tp->qt" contraction

    # one shared transcendental pass: softplus(x) and sigmoid(x) from the same exp
    e = jnp.exp(-jnp.abs(x))
    sp = jnp.maximum(x, 0.0) + jnp.log1p(e)      # softplus(x) == BCE(x, target=0)
    s = jnp.exp(x - sp)                          # sigmoid(x), exact, no divide

    # ones row folds rowsum(sigmoid) into the dice dot (last accumulator column)
    acc_xt[...] += jax.lax.dot_general(x, tt, dn, preferred_element_type=jnp.float32)
    acc_st[...] += jax.lax.dot_general(s, tt, dn, preferred_element_type=jnp.float32)
    acc_sp[...] += jnp.sum(sp, axis=-1, keepdims=True)

    @pl.when(k == pl.num_programs(1) - 1)
    def _():
        logits = logits_ref[0].astype(jnp.float32)   # (BQ, C)
        oh = oh_ref[...]                             # (TT, C) one-hot target labels
        tsum = tsum_ref[...]                         # (1, TT) true target mask sums

        # class cost: -softmax(logits)[:, tgt_ids]
        m = jnp.max(logits, axis=-1, keepdims=True)
        ex = jnp.exp(logits - m)
        prob = ex / jnp.sum(ex, axis=-1, keepdims=True)
        cost_class = -jax.lax.dot_general(prob, oh, dn,
                                          preferred_element_type=jnp.float32)

        a_x = acc_xt[...]
        a_s = acc_st[...]
        xt = a_x[:, :num_tgt]                        # dot(x, t)
        st = a_s[:, :num_tgt]                        # dot(sigmoid(x), t)
        ssum = a_s[:, num_tgt:num_tgt + 1]           # rowsum(sigmoid(x))

        # BCE folded: dot(BCE(x,1),t) + dot(BCE(x,0),1-t) == rowsum(softplus) - dot(x,t)
        bce = (acc_sp[...] - xt) * inv_points        # per-pair mean-over-points BCE
        dice = 1.0 - (2.0 * st + 1.0) / (ssum + tsum + 1.0)

        bce_ref[0] = bce
        dice_ref[0] = dice
        cost_ref[0] = COST_MASK * bce + COST_CLASS * cost_class + COST_DICE * dice


def _ce_kernel(logits_ref, tgt_ref, weight_ref, ce_ref):
    """Weighted cross-entropy (F.cross_entropy with class weights), one layer/step."""
    logits = logits_ref[0].astype(jnp.float32)   # (BQ, C)
    tgt = tgt_ref[0]                             # (BQ, 1) int32
    w = weight_ref[...]                          # (1, C)
    BQ, C = logits.shape
    m = jnp.max(logits, axis=-1, keepdims=True)
    lse = jnp.log(jnp.sum(jnp.exp(logits - m), axis=-1, keepdims=True)) + m
    logp = logits - lse
    cls = jax.lax.broadcasted_iota(jnp.int32, (BQ, C), 1)
    onehot = (cls == tgt).astype(jnp.float32)                    # (BQ, C)
    nll = -jnp.sum(logp * onehot, axis=-1, keepdims=True)        # (BQ, 1)
    wy = jnp.sum(w * onehot, axis=-1, keepdims=True)             # (BQ, 1)
    ce_ref[0] = (jnp.sum(wy * nll, axis=0, keepdims=True)
                 / jnp.sum(wy, axis=0, keepdims=True))


# ----------------------------- Pallas wrappers --------------------------------
def _cost_bce_dice(logits, pred_pts, tgt_ext, tgt_onehot, tgt_sums, *,
                   true_points, point_tile, vmem_limit):
    L, BQ, C = logits.shape
    P_pad = pred_pts.shape[-1]
    TT1 = tgt_ext.shape[0]
    TT = TT1 - 1
    TP = point_tile
    kernel = partial(_cost_kernel, inv_points=1.0 / float(true_points), num_tgt=TT)
    out_shape = tuple(jax.ShapeDtypeStruct((L, BQ, TT), jnp.float32) for _ in range(3))
    return pl.pallas_call(
        kernel,
        out_shape=out_shape,
        grid=(L, P_pad // TP),
        in_specs=[
            pl.BlockSpec((1, BQ, C), lambda l, k: (l, 0, 0)),
            pl.BlockSpec((1, BQ, TP), lambda l, k: (l, 0, k)),
            pl.BlockSpec((TT1, TP), lambda l, k: (0, k)),
            pl.BlockSpec((TT, C), lambda l, k: (0, 0)),
            pl.BlockSpec((1, TT), lambda l, k: (0, 0)),
        ],
        out_specs=tuple(pl.BlockSpec((1, BQ, TT), lambda l, k: (l, 0, 0))
                        for _ in range(3)),
        scratch_shapes=[
            pltpu.VMEM((BQ, TT1), jnp.float32),   # [dot(x, t) | rowsum(x) (unused)]
            pltpu.VMEM((BQ, TT1), jnp.float32),   # [dot(sigmoid, t) | rowsum(sigmoid)]
            pltpu.VMEM((BQ, 1), jnp.float32),     # rowsum(softplus(x))
        ],
        compiler_params=pltpu.CompilerParams(
            dimension_semantics=("parallel", "arbitrary"),
            vmem_limit_bytes=vmem_limit),
    )(logits, pred_pts, tgt_ext, tgt_onehot, tgt_sums)


def _ce_losses(logits, target_classes, weight, vmem_limit):
    L, BQ, C = logits.shape
    out = pl.pallas_call(
        _ce_kernel,
        out_shape=jax.ShapeDtypeStruct((L, 1, 1), jnp.float32),
        grid=(L,),
        in_specs=[
            pl.BlockSpec((1, BQ, C), lambda l: (l, 0, 0)),
            pl.BlockSpec((1, BQ, 1), lambda l: (l, 0, 0)),
            pl.BlockSpec((1, C), lambda l: (0, 0)),
        ],
        out_specs=pl.BlockSpec((1, 1, 1), lambda l: (l, 0, 0)),
        compiler_params=pltpu.CompilerParams(
            dimension_semantics=("parallel",),
            vmem_limit_bytes=vmem_limit),
    )(logits, target_classes, weight)
    return out[:, 0, 0]                                           # (L,)


# ------------------------------- host glue ------------------------------------
def _sem_segmentation_to_class_masks(seg_np):
    targets = []
    for s in seg_np:
        classes = np.unique(s)
        masks = np.stack([(s == c) for c in classes]).astype(np.float32)
        targets.append(dict(labels=classes.astype(np.int32), masks=masks))
    return targets


def _linear_sum_assignment(cost):
    """Optimal assignment on a (Q, T) cost matrix, Q >= T."""
    if _scipy_lsa is not None:
        r, c = _scipy_lsa(cost)
        return np.asarray(r, np.int64), np.asarray(c, np.int64)
    # TODO(synk): brute-force fallback is exponential; fine for tiny demo Q, use a
    #             Jonker-Volgenant solver for real Mask2Former sizes (Q=100).
    Q, T = cost.shape
    cols = np.arange(T)
    best_perm, best_cost = None, np.inf
    for perm in itertools.permutations(range(Q), T):
        cval = cost[list(perm), cols].sum()
        if cval < best_cost:
            best_cost, best_perm = cval, perm
    src = np.asarray(best_perm, dtype=np.int64)
    tgt = np.arange(T, dtype=np.int64)
    order = np.argsort(src)
    return src[order], tgt[order]


def mask2former_set_criterion(output, aux_outputs, segmentation):
    seg_np = np.asarray(jax.device_get(segmentation))
    B, H, W = seg_np.shape
    P = H * W
    C = NUM_CLASSES + 1
    vmem_limit = _vmem_limit_bytes()

    all_outputs = [output] + list(aux_outputs)
    L = len(all_outputs)
    Q = int(all_outputs[0]["pred_logits"].shape[1])
    BQ = B * Q

    # targets: per-image class masks (mirrors sem_segmentation_to_class_masks)
    targets = _sem_segmentation_to_class_masks(seg_np)
    counts = [len(t["labels"]) for t in targets]
    Tmax = max(counts)
    N = sum(counts)
    num_masks = float(max(N, 1))                  # clamp(min=1), world size 1
    TT = B * Tmax                                 # folded batch*target axis
    TT1 = TT + 1                                  # + ones row for rowsum(sigmoid)

    TP, P_pad = _plan_point_tiling(P, BQ + TT1, vmem_limit // 3)

    tgt_onehot = np.zeros((TT, C), np.float32)
    tgt_pts = np.zeros((TT, P), np.float32)
    labels_np = []
    for b, t in enumerate(targets):
        labs = np.asarray(t["labels"], np.int32)
        labels_np.append(labs)
        tgt_onehot[b * Tmax + np.arange(counts[b]), labs] = 1.0
        tgt_pts[b * Tmax:b * Tmax + counts[b]] = t["masks"].reshape(counts[b], P)
    tgt_sums = tgt_pts.sum(axis=1, dtype=np.float32).reshape(1, TT)

    tgt_ext = np.zeros((TT1, P_pad), np.float32)  # padded points stay 0
    tgt_ext[:TT, :P] = tgt_pts
    tgt_ext[TT, :] = 1.0
    tgt_ext_j = jnp.asarray(tgt_ext).astype(jnp.bfloat16)   # binary -> exact in bf16
    tgt_onehot_j = jnp.asarray(tgt_onehot)
    tgt_sums_j = jnp.asarray(tgt_sums)

    # stack all layers (main + aux); cast to bf16 and pad BEFORE stacking so no
    # f32 (L, BQ, P) temporary is ever written to HBM.  Math inside kernels is f32.
    pred_list, logit_list = [], []
    for o in all_outputs:
        pm = jnp.asarray(o["pred_masks"]).reshape(BQ, P).astype(jnp.bfloat16)
        if P_pad > P:
            pm = jnp.pad(pm, ((0, 0), (0, P_pad - P)), constant_values=_NEG_PAD)
        pred_list.append(pm)
        logit_list.append(jnp.asarray(o["pred_logits"], jnp.float32).reshape(BQ, C))
    pred_all = jnp.stack(pred_list)       # (L, BQ, P_pad) bf16
    logits_all = jnp.stack(logit_list)    # (L, BQ, C) f32

    # one kernel: cost matrices + per-pair BCE / dice for every layer
    cost, bce, dice = _cost_bce_dice(
        logits_all, pred_all, tgt_ext_j, tgt_onehot_j, tgt_sums_j,
        true_points=P, point_tile=TP, vmem_limit=vmem_limit)

    # Hungarian matching: single device->host sync (cross-image blocks discarded)
    cost_np = np.asarray(jax.device_get(cost))                  # (L, BQ, TT)
    indices = []
    for l in range(L):
        per_img = []
        for b in range(B):
            sub = cost_np[l, b * Q:(b + 1) * Q, b * Tmax:b * Tmax + counts[b]]
            per_img.append(_linear_sum_assignment(sub))
        indices.append(per_img)

    # loss_labels: batched over layers
    empty_weight = np.ones((1, C), np.float32)
    empty_weight[0, -1] = EOS_COEF
    target_classes = np.full((L, B, Q), NUM_CLASSES, np.int32)
    for l in range(L):
        for b, (src, tgt) in enumerate(indices[l]):
            target_classes[l, b, src] = labels_np[b][tgt]
    loss_ce = _ce_losses(logits_all,
                         jnp.asarray(target_classes.reshape(L, BQ, 1)),
                         jnp.asarray(empty_weight), vmem_limit)

    # loss_masks: sum matched (q, t) entries of the per-pair BCE / dice matrices
    # (dense all-point sampling => identical to recomputing on gathered masks).
    matched_flat = np.zeros((L, N), np.int32)
    for l in range(L):
        flats = []
        for b, (src, tgt) in enumerate(indices[l]):
            flats.append((b * Q + src) * TT + (b * Tmax + tgt))
        matched_flat[l] = np.concatenate(flats)
    idx_j = jnp.asarray(matched_flat)
    loss_mask = (jnp.take_along_axis(bce.reshape(L, BQ * TT), idx_j, axis=1)
                 .sum(axis=1) / num_masks)
    loss_dice = (jnp.take_along_axis(dice.reshape(L, BQ * TT), idx_j, axis=1)
                 .sum(axis=1) / num_masks)

    # exactly mirrors Mask2FormerSetCriterion.forward's result splitting
    main = dict(loss_ce=loss_ce[0], loss_mask=loss_mask[0], loss_dice=loss_dice[0])
    aux = [dict(loss_ce=loss_ce[i + 1], loss_mask=loss_mask[i + 1],
                loss_dice=loss_dice[i + 1]) for i in range(L - 1)]
    return main, aux


# ---------------------------------- demo ---------------------------------------
if __name__ == "__main__":
    B, Q, H, W = 2, 8, 16, 16
    C = NUM_CLASSES + 1
    key = jax.random.PRNGKey(0)
    k1, k2, k3, k4 = jax.random.split(key, 4)

    output = dict(
        pred_logits=jax.random.normal(k1, (B, Q, C), jnp.float32),
        pred_masks=jax.random.normal(k2, (B, Q, H, W), jnp.float32),
    )
    seg = jax.random.randint(k3, (B, H, W), 0, NUM_CLASSES).astype(jnp.int32)
    # make image 0 contain fewer classes (variable targets per image)
    seg = seg.at[0].set(jnp.where(seg[0] == NUM_CLASSES - 1, 0, seg[0]))

    aux_outputs = []
    for i in range(2):
        ka, kb = jax.random.split(jax.random.fold_in(k4, i))
        aux_outputs.append(dict(
            pred_logits=jax.random.normal(ka, (B, Q, C), jnp.float32),
            pred_masks=jax.random.normal(kb, (B, Q, H, W), jnp.float32),
        ))

    main, aux = mask2former_set_criterion(output, aux_outputs, seg)
    for leaf in jax.tree_util.tree_leaves((main, aux)):
        jax.block_until_ready(leaf)
    print("KERNEL_OK")
</pallas_src>

<mosaic_0001>
module attributes {stable_mosaic.version = 11 : i64} {
  func.func @_cost_kernel(%arg0: i32, %arg1: i32, %arg2: memref<1x16x5xf32, #tpu.memory_space<vmem>>, %arg3: memref<1x16x256xbf16, #tpu.memory_space<vmem>>, %arg4: memref<9x256xbf16, #tpu.memory_space<vmem>>, %arg5: memref<8x5xf32, #tpu.memory_space<vmem>>, %arg6: memref<1x8xf32, #tpu.memory_space<vmem>>, %arg7: memref<1x16x8xf32, #tpu.memory_space<vmem>>, %arg8: memref<1x16x8xf32, #tpu.memory_space<vmem>>, %arg9: memref<1x16x8xf32, #tpu.memory_space<vmem>>, %arg10: memref<16x9xf32, #tpu.memory_space<vmem>>, %arg11: memref<16x9xf32, #tpu.memory_space<vmem>>, %arg12: memref<16x1xf32, #tpu.memory_space<vmem>>) attributes {dimension_semantics = [#tpu.dimension_semantics<parallel>, #tpu.dimension_semantics<arbitrary>], iteration_bounds = array<i64: 3, 1>, scalar_prefetch = 0 : i64, scratch_operands = 3 : i64, tpu.core_type = #tpu.core_type<tc>, window_params = [{transform_indices = @transform_0, window_bounds = array<i64: 1, 16, 5>}, {transform_indices = @transform_1, window_bounds = array<i64: 1, 16, 256>}, {transform_indices = @transform_2, window_bounds = array<i64: 9, 256>}, {pipeline_mode = #tpu.pipeline_mode<synchronous>, transform_indices = @transform_3, window_bounds = array<i64: 8, 5>}, {pipeline_mode = #tpu.pipeline_mode<synchronous>, transform_indices = @transform_4, window_bounds = array<i64: 1, 8>}, {transform_indices = @transform_5, window_bounds = array<i64: 1, 16, 8>}, {transform_indices = @transform_6, window_bounds = array<i64: 1, 16, 8>}, {transform_indices = @transform_7, window_bounds = array<i64: 1, 16, 8>}]} {
    %c0_i32 = arith.constant 0 : i32
    %0 = arith.cmpi eq, %arg1, %c0_i32 : i32
    %1 = arith.extui %0 : i1 to i32
    %c0_i32_0 = arith.constant 0 : i32
    %2 = arith.cmpi ne, %1, %c0_i32_0 : i32
    scf.if %2 {
      %cst_23 = arith.constant 0.000000e+00 : f32
      %34 = vector.broadcast %cst_23 : f32 to vector<16x9xf32>
      %c0_24 = arith.constant 0 : index
      %c0_25 = arith.constant 0 : index
      %35 = vector.load %arg10[%c0_24, %c0_25] : memref<16x9xf32, #tpu.memory_space<vmem>>, vector<16x9xf32>
      tpu.vector_store %arg10[%c0_24, %c0_25], %34 {strides = array<i32>} : memref<16x9xf32, #tpu.memory_space<vmem>>, vector<16x9xf32>,
      %cst_26 = arith.constant 0.000000e+00 : f32
      %36 = vector.broadcast %cst_26 : f32 to vector<16x9xf32>
      %c0_27 = arith.constant 0 : index
      %c0_28 = arith.constant 0 : index
      %37 = vector.load %arg11[%c0_27, %c0_28] : memref<16x9xf32, #tpu.memory_space<vmem>>, vector<16x9xf32>
      tpu.vector_store %arg11[%c0_27, %c0_28], %36 {strides = array<i32>} : memref<16x9xf32, #tpu.memory_space<vmem>>, vector<16x9xf32>,
      %cst_29 = arith.constant 0.000000e+00 : f32
      %38 = vector.broadcast %cst_29 : f32 to vector<16x1xf32>
      %c0_30 = arith.constant 0 : index
      %c0_31 = arith.constant 0 : index
      %39 = vector.load %arg12[%c0_30, %c0_31] : memref<16x1xf32, #tpu.memory_space<vmem>>, vector<16x1xf32>
      tpu.vector_store %arg12[%c0_30, %c0_31], %38 {strides = array<i32>} : memref<16x1xf32, #tpu.memory_space<vmem>>, vector<16x1xf32>,
    } else {
    }
    %c0 = arith.constant 0 : index
    %c0_1 = arith.constant 0 : index
    %c0_2 = arith.constant 0 : index
    %3 = vector.load %arg3[%c0, %c0_1, %c0_2] : memref<1x16x256xbf16, #tpu.memory_space<vmem>>, vector<1x16x256xbf16>
    %4 = vector.shape_cast %3 : vector<1x16x256xbf16> to vector<16x256xbf16>
    %5 = arith.extf %4 : vector<16x256xbf16> to vector<16x256xf32>
    %c0_3 = arith.constant 0 : index
    %c0_4 = arith.constant 0 : index
    %6 = vector.load %arg4[%c0_3, %c0_4] : memref<9x256xbf16, #tpu.memory_space<vmem>>, vector<9x256xbf16>
    %7 = arith.extf %6 : vector<9x256xbf16> to vector<9x256xf32>
    %8 = math.absf %5 : vector<16x256xf32>
    %cst = arith.constant 0.000000e+00 : f32
    %9 = vector.broadcast %cst : f32 to vector<16x256xf32>
    %10 = arith.subf %9, %8 : vector<16x256xf32>
    %11 = math.exp %10 : vector<16x256xf32>
    %cst_5 = arith.constant 0.000000e+00 : f32
    %12 = vector.broadcast %cst_5 : f32 to vector<16x256xf32>
    %13 = arith.maximumf %5, %12 : vector<16x256xf32>
    %14 = math.log1p %11 : vector<16x256xf32>
    %15 = arith.addf %13, %14 : vector<16x256xf32>
    %16 = arith.subf %5, %15 : vector<16x256xf32>
    %17 = math.exp %16 : vector<16x256xf32>
    %c0_6 = arith.constant 0 : index
    %c0_7 = arith.constant 0 : index
    %18 = vector.load %arg10[%c0_6, %c0_7] : memref<16x9xf32, #tpu.memory_space<vmem>>, vector<16x9xf32>
    %cst_8 = arith.constant dense<0.000000e+00> : vector<16x9xf32>
    %19 = tpu.matmul %5, %7, %cst_8 {dimension_numbers = #tpu.dot_dimension_numbers<[1], [1], [0], [0], [0, 0, 1, 0], [], []>} : vector<16x256xf32>, vector<9x256xf32>, vector<16x9xf32> -> vector<16x9xf32>
    %20 = arith.addf %18, %19 : vector<16x9xf32>
    %c0_9 = arith.constant 0 : index
    %c0_10 = arith.constant 0 : index
    %21 = vector.load %arg10[%c0_9, %c0_10] : memref<16x9xf32, #tpu.memory_space<vmem>>, vector<16x9xf32>
    tpu.vector_store %arg10[%c0_9, %c0_10], %20 {strides = array<i32>} : memref<16x9xf32, #tpu.memory_space<vmem>>, vector<16x9xf32>,
    %c0_11 = arith.constant 0 : index
    %c0_12 = arith.constant 0 : index
    %22 = vector.load %arg11[%c0_11, %c0_12] : memref<16x9xf32, #tpu.memory_space<vmem>>, vector<16x9xf32>
    %cst_13 = arith.constant dense<0.000000e+00> : vector<16x9xf32>
    %23 = tpu.matmul %17, %7, %cst_13 {dimension_numbers = #tpu.dot_dimension_numbers<[1], [1], [0], [0], [0, 0, 1, 0], [], []>} : vector<16x256xf32>, vector<9x256xf32>, vector<16x9xf32> -> vector<16x9xf32>
    %24 = arith.addf %22, %23 : vector<16x9xf32>
    %c0_14 = arith.constant 0 : index
    %c0_15 = arith.constant 0 : index
    %25 = vector.load %arg11[%c0_14, %c0_15] : memref<16x9xf32, #tpu.memory_space<vmem>>, vector<16x9xf32>
    tpu.vector_store %arg11[%c0_14, %c0_15], %24 {strides = array<i32>} : memref<16x9xf32, #tpu.memory_space<vmem>>, vector<16x9xf32>,
    %c0_16 = arith.constant 0 : index
    %c0_17 = arith.constant 0 : index
    %26 = vector.load %arg12[%c0_16, %c0_17] : memref<16x1xf32, #tpu.memory_space<vmem>>, vector<16x1xf32>
    %cst_18 = arith.constant dense<0.000000e+00> : vector<16xf32>
    %27 = vector.multi_reduction <add>, %15, %cst_18 [1] : vector<16x256xf32> to vector<16xf32>
    %28 = vector.shape_cast %27 : vector<16xf32> to vector<16x1xf32>
    %29 = arith.addf %26, %28 : vector<16x1xf32>
    %c0_19 = arith.constant 0 : index
    %c0_20 = arith.constant 0 : index
    %30 = vector.load %arg12[%c0_19, %c0_20] : memref<16x1xf32, #tpu.memory_space<vmem>>, vector<16x1xf32>
    tpu.vector_store %arg12[%c0_19, %c0_20], %29 {strides = array<i32>} : memref<16x1xf32, #tpu.memory_space<vmem>>, vector<16x1xf32>,
    %c0_i32_21 = arith.constant 0 : i32
    %31 = arith.cmpi eq, %arg1, %c0_i32_21 : i32
    %32 = arith.extui %31 : i1 to i32
    %c0_i32_22 = arith.constant 0 : i32
    %33 = arith.cmpi ne, %32, %c0_i32_22 : i32
    scf.if %33 {
      %c0_23 = arith.constant 0 : index
      %c0_24 = arith.constant 0 : index
      %c0_25 = arith.constant 0 : index
      %34 = vector.load %arg2[%c0_23, %c0_24, %c0_25] : memref<1x16x5xf32, #tpu.memory_space<vmem>>, vector<1x16x5xf32>
      %35 = vector.shape_cast %34 : vector<1x16x5xf32> to vector<16x5xf32>
      %c0_26 = arith.constant 0 : index
      %c0_27 = arith.constant 0 : index
      %36 = vector.load %arg5[%c0_26, %c0_27] : memref<8x5xf32, #tpu.memory_space<vmem>>, vector<8x5xf32>
      %c0_28 = arith.constant 0 : index
      %c0_29 = arith.constant 0 : index
      %37 = vector.load %arg6[%c0_28, %c0_29] : memref<1x8xf32, #tpu.memory_space<vmem>>, vector<1x8xf32>
      %cst_30 = arith.constant dense<0xFF800000> : vector<16xf32>
      %38 = vector.multi_reduction <maximumf>, %35, %cst_30 [1] : vector<16x5xf32> to vector<16xf32>
      %39 = vector.shape_cast %38 : vector<16xf32> to vector<16x1xf32>
      %40 = vector.broadcast %39 : vector<16x1xf32> to vector<16x5xf32>
      %41 = arith.subf %35, %40 : vector<16x5xf32>
      %42 = math.exp %41 : vector<16x5xf32>
      %cst_31 = arith.constant dense<0.000000e+00> : vector<16xf32>
      %43 = vector.multi_reduction <add>, %42, %cst_31 [1] : vector<16x5xf32> to vector<16xf32>
      %44 = vector.shape_cast %43 : vector<16xf32> to vector<16x1xf32>
      %45 = vector.broadcast %44 : vector<16x1xf32> to vector<16x5xf32>
      %46 = arith.divf %42, %45 : vector<16x5xf32>
      %cst_32 = arith.constant dense<0.000000e+00> : vector<16x8xf32>
      %47 = tpu.matmul %46, %36, %cst_32 {dimension_numbers = #tpu.dot_dimension_numbers<[1], [1], [0], [0], [0, 0, 1, 0], [], []>} : vector<16x5xf32>, vector<8x5xf32>, vector<16x8xf32> -> vector<16x8xf32>
      %cst_33 = arith.constant 0.000000e+00 : f32
      %48 = vector.broadcast %cst_33 : f32 to vector<16x8xf32>
      %49 = arith.subf %48, %47 : vector<16x8xf32>
      %c0_34 = arith.constant 0 : index
      %c0_35 = arith.constant 0 : index
      %50 = vector.load %arg10[%c0_34, %c0_35] : memref<16x9xf32, #tpu.memory_space<vmem>>, vector<16x9xf32>
      %c0_36 = arith.constant 0 : index
      %c0_37 = arith.constant 0 : index
      %51 = vector.load %arg11[%c0_36, %c0_37] : memref<16x9xf32, #tpu.memory_space<vmem>>, vector<16x9xf32>
      %52 = vector.extract_strided_slice %50 {offsets = [0, 0], sizes = [16, 8], strides = [1, 1]} : vector<16x9xf32> to vector<16x8xf32>
      %53 = vector.extract_strided_slice %51 {offsets = [0, 0], sizes = [16, 8], strides = [1, 1]} : vector<16x9xf32> to vector<16x8xf32>
      %54 = vector.extract_strided_slice %51 {offsets = [0, 8], sizes = [16, 1], strides = [1, 1]} : vector<16x9xf32> to vector<16x1xf32>
      %c0_38 = arith.constant 0 : index
      %c0_39 = arith.constant 0 : index
      %55 = vector.load %arg12[%c0_38, %c0_39] : memref<16x1xf32, #tpu.memory_space<vmem>>, vector<16x1xf32>
      %56 = vector.broadcast %55 : vector<16x1xf32> to vector<16x8xf32>
      %57 = arith.subf %56, %52 : vector<16x8xf32>
      %cst_40 = arith.constant 3.906250e-03 : f32
      %58 = vector.broadcast %cst_40 : f32 to vector<16x8xf32>
      %59 = arith.mulf %57, %58 : vector<16x8xf32>
      %cst_41 = arith.constant 2.000000e+00 : f32
      %60 = vector.broadcast %cst_41 : f32 to vector<16x8xf32>
      %61 = arith.mulf %60, %53 : vector<16x8xf32>
      %cst_42 = arith.constant 1.000000e+00 : f32
      %62 = vector.broadcast %cst_42 : f32 to vector<16x8xf32>
      %63 = arith.addf %61, %62 : vector<16x8xf32>
      %64 = vector.broadcast %54 : vector<16x1xf32> to vector<16x8xf32>
      %65 = vector.broadcast %37 : vector<1x8xf32> to vector<16x8xf32>
      %66 = arith.addf %64, %65 : vector<16x8xf32>
      %cst_43 = arith.constant 1.000000e+00 : f32
      %67 = vector.broadcast %cst_43 : f32 to vector<16x8xf32>
      %68 = arith.addf %66, %67 : vector<16x8xf32>
      %69 = arith.divf %63, %68 : vector<16x8xf32>
      %cst_44 = arith.constant 1.000000e+00 : f32
      %70 = vector.broadcast %cst_44 : f32 to vector<16x8xf32>
      %71 = arith.subf %70, %69 : vector<16x8xf32>
      %c0_45 = arith.constant 0 : index
      %c0_46 = arith.constant 0 : index
      %c0_47 = arith.constant 0 : index
      %72 = vector.load %arg8[%c0_45, %c0_46, %c0_47] : memref<1x16x8xf32, #tpu.memory_space<vmem>>, vector<1x16x8xf32>
      %73 = vector.shape_cast %72 : vector<1x16x8xf32> to vector<16x8xf32>
      %74 = vector.shape_cast %59 : vector<16x8xf32> to vector<1x16x8xf32>
      tpu.vector_store %arg8[%c0_45, %c0_46, %c0_47], %74 {strides = array<i32>} : memref<1x16x8xf32, #tpu.memory_space<vmem>>, vector<1x16x8xf32>,
      %c0_48 = arith.constant 0 : index
      %c0_49 = arith.constant 0 : index
      %c0_50 = arith.constant 0 : index
      %75 = vector.load %arg9[%c0_48, %c0_49, %c0_50] : memref<1x16x8xf32, #tpu.memory_space<vmem>>, vector<1x16x8xf32>
      %76 = vector.shape_cast %75 : vector<1x16x8xf32> to vector<16x8xf32>
      %77 = vector.shape_cast %71 : vector<16x8xf32> to vector<1x16x8xf32>
      tpu.vector_store %arg9[%c0_48, %c0_49, %c0_50], %77 {strides = array<i32>} : memref<1x16x8xf32, #tpu.memory_space<vmem>>, vector<1x16x8xf32>,
      %cst_51 = arith.constant 5.000000e+00 : f32
      %78 = vector.broadcast %cst_51 : f32 to vector<16x8xf32>
      %79 = arith.mulf %78, %59 : vector<16x8xf32>
      %cst_52 = arith.constant 2.000000e+00 : f32
      %80 = vector.broadcast %cst_52 : f32 to vector<16x8xf32>
      %81 = arith.mulf %80, %49 : vector<16x8xf32>
      %82 = arith.addf %79, %81 : vector<16x8xf32>
      %cst_53 = arith.constant 5.000000e+00 : f32
      %83 = vector.broadcast %cst_53 : f32 to vector<16x8xf32>
      %84 = arith.mulf %83, %71 : vector<16x8xf32>
      %85 = arith.addf %82, %84 : vector<16x8xf32>
      %c0_54 = arith.constant 0 : index
      %c0_55 = arith.constant 0 : index
      %c0_56 = arith.constant 0 : index
      %86 = vector.load %arg7[%c0_54, %c0_55, %c0_56] : memref<1x16x8xf32, #tpu.memory_space<vmem>>, vector<1x16x8xf32>
      %87 = vector.shape_cast %86 : vector<1x16x8xf32> to vector<16x8xf32>
      %88 = vector.shape_cast %85 : vector<16x8xf32> to vector<1x16x8xf32>
      tpu.vector_store %arg7[%c0_54, %c0_55, %c0_56], %88 {strides = array<i32>} : memref<1x16x8xf32, #tpu.memory_space<vmem>>, vector<1x16x8xf32>,
    } else {
    }
    return
  }
  func.func @transform_0(%arg0: i32, %arg1: i32) -> (i32, i32, i32) {
    %c0_i32 = arith.constant 0 : i32
    %c0_i32_0 = arith.constant 0 : i32
    %c0_i32_1 = arith.constant 0 : i32
    return %arg0, %c0_i32, %c0_i32_0 : i32, i32, i32
  }
  func.func @transform_1(%arg0: i32, %arg1: i32) -> (i32, i32, i32) {
    %c0_i32 = arith.constant 0 : i32
    %c0_i32_0 = arith.constant 0 : i32
    return %arg0, %c0_i32, %arg1 : i32, i32, i32
  }
  func.func @transform_2(%arg0: i32, %arg1: i32) -> (i32, i32) {
    %c0_i32 = arith.constant 0 : i32
    %c0_i32_0 = arith.constant 0 : i32
    return %c0_i32, %arg1 : i32, i32
  }
  func.func @transform_3(%arg0: i32, %arg1: i32) -> (i32, i32) {
    %c0_i32 = arith.constant 0 : i32
    %c0_i32_0 = arith.constant 0 : i32
    %c0_i32_1 = arith.constant 0 : i32
    return %c0_i32, %c0_i32_0 : i32, i32
  }
  func.func @transform_4(%arg0: i32, %arg1: i32) -> (i32, i32) {
    %c0_i32 = arith.constant 0 : i32
    %c0_i32_0 = arith.constant 0 : i32
    %c0_i32_1 = arith.constant 0 : i32
    return %c0_i32, %c0_i32_0 : i32, i32
  }
  func.func @transform_5(%arg0: i32, %arg1: i32) -> (i32, i32, i32) {
    %c0_i32 = arith.constant 0 : i32
    %c0_i32_0 = arith.constant 0 : i32
    %c0_i32_1 = arith.constant 0 : i32
    return %arg0, %c0_i32, %c0_i32_0 : i32, i32, i32
  }
  func.func @transform_6(%arg0: i32, %arg1: i32) -> (i32, i32, i32) {
    %c0_i32 = arith.constant 0 : i32
    %c0_i32_0 = arith.constant 0 : i32
    %c0_i32_1 = arith.constant 0 : i32
    return %arg0, %c0_i32, %c0_i32_0 : i32, i32, i32
  }
  func.func @transform_7(%arg0: i32, %arg1: i32) -> (i32, i32, i32) {
    %c0_i32 = arith.constant 0 : i32
    %c0_i32_0 = arith.constant 0 : i32
    %c0_i32_1 = arith.constant 0 : i32
    return %arg0, %c0_i32, %c0_i32_0 : i32, i32, i32
  }
}

</mosaic_0001>

<bundles_post_ra>
// kernel: tpu_custom_call.1
= control target key start
LH: loop header
LB: loop body
LE: loop exit
PB: predicated region body
PF: predicated region fallthrough
CT: control target
= control target key end

     0   :  { %13 = vsyncpa [#allocation6], 0  ;;  %s1168_s24 = smov 0   ;;  %s1170_s25 = smov 0   ;;  %s1305_s0 = inlined_call_operand.vmem [shape: f32[3,16,5], index: 0, kind: input, shape index: {}]   ;;  %s1306_s1 = inlined_call_operand.vmem [shape: bf16[3,16,256], index: 1, kind: input, shape index: {}]   ;;  %s1307_s2 = inlined_call_operand.vmem [shape: bf16[9,256], index: 2, kind: input, shape index: {}]   ;;  %s1308_s3 = inlined_call_operand.hbm [shape: f32[8,5], index: 3, kind: input, shape index: {}]   ;;  %s1309_s4 = inlined_call_operand.vmem [shape: f32[1,8], index: 4, kind: input, shape index: {}]   ;;  %s1310_s5 = inlined_call_operand.vmem [shape: f32[3,16,8], index: 5, kind: output, shape index: {0}]   ;;  %s1311_s6 = inlined_call_operand.vmem [shape: f32[3,16,8], index: 6, kind: output, shape index: {1}]   ;;  %s1312_s7 = inlined_call_operand.vmem [shape: f32[3,16,8], index: 7, kind: output, shape index: {2}]  }
   0x1   :  { %s1172_s26 = smov 0  }
   0x2 LB: > { %s958_s27 = sadd.s32 4294967295, %s1122_s26   ;;  %s31_s28 = sadd.s32 1, %s1118_s25  ;;  %s1122_s26 = sphi %s1172_s26, %s19_s26   ;;  %s1118_s25 = sphi %s1170_s25, %s1316_s25   ;;  %s1114_s24 = sphi %s1168_s24, %s1315_s24  }
   0x3   : > { %p33_p0 = scmp.ge.s32.totalorder %s31_s28, 3  ;;  %p960_p1 = scmp.ge.s32.totalorder %s1122_s26, 1 }
   0x4   : > { %p236_p2 = scmp.lt.s32.totalorder %s1122_s26, 4  ;;  %p996_p4 = scmp.eq.s32.totalorder %s958_s27, 0 }
   0x5   : > { %s1318_s28 = smov (%p33_p0, %s31_s28), 0  ;;  %s257_s8 = sshll.u32 %s1308_s3, 4  ;;  %s258_s8 = int_to_ptr.hbm [resolvable:$true] %s257_s8 }
   0x6   : > { %p237_p3 = pnand %p960_p1, %p236_p2  ;;  %s1124_s9 = smov [#allocation5]  }
   0x7   : > { %s259_s10 = sshll.u32 %s1124_s9, 4  ;;  %s260_s10 = int_to_ptr.vmem [resolvable:$true] %s259_s10 }
   0x8   : > { %p992_p5 = pneg %p237_p3  ;;  %296 = sbr.rel (%p237_p3) target bundleno = 427 (0x1ab), region = 40 }
   0xa   : > { %p993_p6 = pnand %p996_p4, %p992_p5 }
   0xc   : > { %995 = dma.hbm_to_vmem [thread:$0]  (!%p993_p6), %s258_s8, 128, %s260_s10, [#allocation6]  }
   0xd   : > { %1109 = dma.done.wait (%p996_p4), [#allocation6], 128  }
   0xe   : > { %1111 = vsyncadd (%p996_p4), [#allocation6], 4294967168  ;;  %p353_p7 = scmp.lt.s32.totalorder %s1114_s24, 2  ;;  %vm610_vm0 = vcmask 39936   ;;  %v408_v4 = vld [vmem:[%s1307_s2 + $0x8] sm:$0x11] }
   0xf   : > { %v407_v5 = vld [vmem:[%s1307_s2] sm:$0xff]  ;;  %v411_v9 = vunpack.c.l.bf16 %v408_v4  ;;  %v412_v10 = vunpack.c.h.bf16 %v408_v4  ;;  %vm393_vm5 = vcmask 72704   ;;  %vm398_vm6 = vcmask 7168  }
  0x10   : > { %s1320_s24 = smov (!%p353_p7, %s1114_s24), 2  ;;  %v409_v14 = vunpack.c.l.bf16 %v407_v5  ;;  %v410_v15 = vunpack.c.h.bf16 %v407_v5 }
  0x11   : > { %s1190_s11 = sshll.u32 %s1320_s24, 4  ;;  %554 = vmatpush.xpose.msra.mxu2 %v411_v9  ;;  %577 = vmatpush.xpose.msra.mxu3 %v412_v10 }
  0x12   : > { %s357_s14 = scalar_lea.vmem %s1305_s0, %s1190_s11  ;;  %s366_s17 = scalar_lea.vmem %s1306_s1, %s1190_s11  ;;  %986 = vmatpush.xpose.msra.mxu1 %v411_v9  ;;  %501 = vmatpush.xpose.msra.mxu0 %v411_v9 }
  0x13   : > { %v1200_v0 = vld [vmem:[%s357_s14] sm:$0xff]  ;;  %v402_v2 = vld [vmem:[%s366_s17 + $0x8] sm:$0xff]  ;;  %s388_s29 = scalar_lea.vmem %s1312_s7, %s1190_s11  ;;  %s383_s9 = scalar_lea.vmem %s1311_s6, %s1190_s11 }
  0x14   : > { %v401_v1 = vld [vmem:[%s366_s17] sm:$0xff]  ;;  %v611_v3 = vsel %vm610_vm0, %v1200_v0, -inf  ;;  %v1214_v8 = vunpack.c.l.bf16 %v402_v2  ;;  %v1218_v13 = vld [vmem:[%s357_s14 + $0x8] sm:$0xff]  ;;  %v1221_v17 = vunpack.c.h.bf16 %v402_v2  ;;  %s378_s13 = scalar_lea.vmem %s1310_s5, %s1190_s11 }
  0x15   : > { %v1210_v6 = vunpack.c.l.bf16 %v401_v1  ;;  %v1212_v7 = vunpack.c.h.bf16 %v401_v1  ;;  %612 = vmax.xlane.f32.xlu0 %v611_v3  ;;  %v614_v22 = vsel %vm610_vm0, %v1218_v13, -inf  ;;  %555 = vmatpush.xpose.msra.mxu2 %v409_v14 }
  0x16   : > { %v415_v16 = vand.u32 2147483647, %v1214_v8  ;;  %v416_v21 = vand.u32 2147483647, %v1221_v17  ;;  %578 = vmatpush.xpose.msra.mxu3 %v410_v15  ;;  %987 = vmatpush.xpose.msra.mxu1 %v409_v14  ;;  %v431_v59 = vmax.f32 %v1214_v8, 0.0  ;;  %v432_v3 = vmax.f32 %v1221_v17, 0.0 }
  0x17   : > { %v413_v11 = vand.u32 2147483647, %v1210_v6  ;;  %v414_v12 = vand.u32 2147483647, %v1212_v7  ;;  %502 = vmatpush.xpose.msra.mxu0 %v409_v14  ;;  %v429_v49 = vmax.f32 %v1210_v6, 0.0  ;;  %v430_v55 = vmax.f32 %v1212_v7, 0.0 }
  0x18   : > { %v419_v20 = vsub.f32 0.0, %v415_v16  ;;  %v420_v26 = vsub.f32 0.0, %v416_v21 }
  0x19   : > { %v417_v18 = vsub.f32 0.0, %v413_v11  ;;  %v418_v19 = vsub.f32 0.0, %v414_v12  ;;  %506 = vmatmul.f32.vlgmr.msra.gmra.mxu1 %v1214_v8 }
  0x1a   : > { %v425_v25 = vmul.f32 1.442695, %v419_v20  ;;  %v427_v27 = vmul.f32 1.442695, %v420_v26  ;;  %524 = vmatpush.xpose.msrb.mxu1 %v412_v10  ;;  %503 = vmatmul.f32.vlgmr.msra.gmra.mxu0 %v1210_v6 }
  0x1b   : > { %v421_v23 = vmul.f32 1.442695, %v417_v18  ;;  %v423_v24 = vmul.f32 1.442695, %v418_v19 }
  0x1d   : > { %1030 = vpow2.f32 %v421_v23  ;;  %615 = vmax.xlane.f32.xlu0 %v614_v22 }
  0x1e   : > { %1032 = vpow2.f32 %v423_v24  ;;  %525 = vmatpush.xpose.msrb.mxu1 %v410_v15 }
  0x1f   : > { %1034 = vpow2.f32 %v425_v25 }
  0x20   : > { %1036 = vpow2.f32 %v427_v27 }
  0x21   : > { %526 = vmatmul.f32.vlgmr.msrb.gmra.mxu1 %v1212_v7 }
  0x23   : > { %v1031_v28 = vpop.eup %1030 }
  0x24   : > { %v1033_v29 = vpop.eup %1032  ;;  %v433_v30 = vadd.f32 1.0, %v1031_v28  ;;  %v436_v31 = vmul.f32 -0.5, %v1031_v28  ;;  %v439_v39 = vand.u32 2147483647, %v1031_v28 }
  0x25   : > { %v1035_v32 = vpop.eup %1034  ;;  %v442_v33 = vadd.f32 1.0, %v1033_v29  ;;  %v445_v34 = vmul.f32 -0.5, %v1033_v29  ;;  %v448_v42 = vand.u32 2147483647, %v1033_v29 }
  0x26   : > { %v1037_v35 = vpop.eup %1036  ;;  %1038 = vlog2.f32 %v433_v30  ;;  %v451_v36 = vadd.f32 1.0, %v1035_v32  ;;  %v437_v37 = vadd.f32 1.0, %v436_v31  ;;  %v454_v38 = vmul.f32 -0.5, %v1035_v32 }
  0x27   : > { %1040 = vlog2.f32 %v442_v33  ;;  %v446_v40 = vadd.f32 1.0, %v445_v34  ;;  %v460_v41 = vadd.f32 1.0, %v1037_v35  ;;  %v463_v44 = vmul.f32 -0.5, %v1037_v35 }
  0x28   : > { %1042 = vlog2.f32 %v451_v36  ;;  %v455_v43 = vadd.f32 1.0, %v454_v38  ;;  %v457_v45 = vand.u32 2147483647, %v1035_v32  ;;  %v438_v46 = vmul.f32 %v1031_v28, %v437_v37 }
  0x29   : > { %1044 = vlog2.f32 %v460_v41  ;;  %v464_v47 = vadd.f32 1.0, %v463_v44  ;;  %vm1230_vm1 = vcmp.lt.f32.partialorder %v439_v39, 0.0004427343  ;;  %v447_v51 = vmul.f32 %v1033_v29, %v446_v40  ;;  %529 = vmatmul.f32.gmra.mxu1 %v1221_v17 }
  0x2a   : > { %v466_v52 = vand.u32 2147483647, %v1037_v35  ;;  %vm449_vm2 = vcmp.lt.f32.partialorder %v448_v42, 0.0004427343  ;;  %v456_v56 = vmul.f32 %v1035_v32, %v455_v43  ;;  %vm458_vm3 = vcmp.lt.f32.partialorder %v457_v45, 0.0004427343 }
  0x2b   : > { %v465_v62 = vmul.f32 %v1037_v35, %v464_v47  ;;  %v1125_v34 = vmov 0.0   ;;  %v608_v47 = vld [vmem:[#allocation5] sm:$0xff] }
  0x2c   : > { %v1039_v48 = vpop.eup %1038  ;;  %vm467_vm4 = vcmp.lt.f32.partialorder %v466_v52, 0.0004427343  ;;  %396 = vst.msk [vmem:[#allocation3] sm:$0xff] %vm393_vm5, %v1125_v34  ;;  %976 = vmatpush.xpose.msk.msrb.mxu0 %vm610_vm0, %v608_v47 }
  0x2d   : > { %v1041_v53 = vpop.eup %1040  ;;  %v435_v54 = vmul.f32 0.6931472, %v1039_v48  ;;  %394 = vst.msk [vmem:[#allocation2] sm:$0xff] %vm393_vm5, %v1125_v34 }
  0x2e   : > { %v1043_v57 = vpop.eup %1042  ;;  %v444_v58 = vmul.f32 0.6931472, %v1041_v53  ;;  %395 = vst.msk [vmem:[#allocation2 + $0x8] sm:$0xff] %vm393_vm5, %v1125_v34 }
  0x2f   : > { %v441_v60 = vsel %vm1230_vm1, %v438_v46, %v435_v54  ;;  %v453_v61 = vmul.f32 0.6931472, %v1043_v57  ;;  %v1045_v63 = vpop.eup %1044  ;;  %397 = vst.msk [vmem:[#allocation3 + $0x8] sm:$0xff] %vm393_vm5, %v1125_v34  ;;  %v1127_v54 = vmov 0  }
  0x30   : > { %v469_v1 = vadd.f32 %v441_v60, %v429_v49  ;;  %v450_v2 = vsel %vm449_vm2, %v447_v51, %v444_v58  ;;  %v462_v9 = vmul.f32 0.6931472, %v1045_v63  ;;  %399 = vst.msk [vmem:[#allocation4] sm:$0xff] %vm398_vm6, %v1125_v34  ;;  %1028 = vset.pattern.permute.xlu2 %v1127_v54 }
  0x31   : > { %v470_v4 = vadd.f32 %v450_v2, %v430_v55  ;;  %v459_v5 = vsel %vm458_vm3, %v456_v56, %v453_v61  ;;  %400 = vst.msk [vmem:[#allocation4 + $0x8] sm:$0xff] %vm398_vm6, %v1125_v34 }
  0x32   : > { %v473_v10 = vsub.f32 %v1210_v6, %v469_v1  ;;  %v471_v11 = vadd.f32 %v459_v5, %v431_v59  ;;  %v468_v14 = vsel %vm467_vm4, %v465_v62, %v462_v9 }
  0x33   : > { %v474_v12 = vsub.f32 %v1212_v7, %v470_v4  ;;  %v472_v18 = vadd.f32 %v468_v14, %v432_v3  ;;  %v592_v25 = vadd.f32 %v470_v4, %v469_v1  ;;  %v538_v36 = vld [vmem:[#allocation3] sm:$0xff] }
  0x34   : > { %v477_v15 = vmul.f32 1.442695, %v473_v10  ;;  %v475_v16 = vsub.f32 %v1214_v8, %v471_v11 }
  0x35   : > { %v479_v19 = vmul.f32 1.442695, %v474_v12  ;;  %v476_v20 = vsub.f32 %v1221_v17, %v472_v18  ;;  %593 = vadd.xlane.f32.xlu2 %v592_v25  ;;  %v595_v8 = vadd.f32 %v472_v18, %v471_v11 }
  0x36   : > { %1046 = vpow2.f32 %v477_v15  ;;  %v481_v21 = vmul.f32 1.442695, %v475_v16  ;;  %v539_v41 = vld [vmem:[#allocation3 + $0x8] sm:$0xff] }
  0x37   : > { %1048 = vpow2.f32 %v479_v19  ;;  %v483_v22 = vmul.f32 1.442695, %v476_v20  ;;  %v590_v49 = vld [vmem:[#allocation4] sm:$0xff] }
  0x38   : > { %1050 = vpow2.f32 %v481_v21  ;;  %v591_v52 = vld [vmem:[#allocation4 + $0x8] sm:$0xff] }
  0x39   : > { %1052 = vpow2.f32 %v483_v22 }
  0x3c   : > { %v1047_v23 = vpop.eup %1046 }
  0x3d   : > { %v1049_v24 = vpop.eup %1048  ;;  %556 = vmatmul.f32.vlgmr.msra.gmra.mxu2 %v1047_v23  ;;  %596 = vadd.xlane.f32.xlu2 %v595_v8 }
  0x3e   : > { %579 = vmatmul.f32.vlgmr.msra.gmra.mxu3 %v1049_v24  ;;  %v1051_v6 = vpop.eup %1050  ;;  %v1029_v24 = vld [vmem:[%s1309_s4] ss:$0 sm:$0xff] }
  0x3f   : > { %v1053_v7 = vpop.eup %1052 }
  0x45   : > { %559 = vmatmul.f32.gmra.mxu2 %v1051_v6 }
  0x46   : > { %582 = vmatmul.f32.gmra.mxu3 %v1053_v7 }
  0x88   : > { %v613_v26 = vpop.xlane.xlu0 %612 }
  0x89   : > { %v617_v17 = vsub.f32 %v1200_v0, %v613_v26 }
  0x8b   : > { %v619_v27 = vmul.f32 1.442695, %v617_v17  ;;  %v486_v17 = vld [vmem:[#allocation2 + $0x8] sm:$0xff] }
  0x8d   : > { %1054 = vpow2.f32 %v619_v27 }
  0x90   : > { %v616_v28 = vpop.xlane.xlu0 %615 }
  0x91   : > { %v618_v29 = vsub.f32 %v1218_v13, %v616_v28  ;;  %v1126_v13 = vmov 8  }
  0x92   : > { %1026 = vset.pattern.permute.xlu0 %v1126_v13  ;;  %1027 = vset.pattern.permute.xlu1 %v1126_v13 }
  0x93   : > { %v1246_v30 = vpop.eup %1054  ;;  %v621_v31 = vmul.f32 1.442695, %v618_v29 }
  0x94   : > { %v623_v32 = vsel %vm610_vm0, %v1246_v30, 0.0 }
  0x95   : > { %1056 = vpow2.f32 %v621_v31  ;;  %624 = vadd.xlane.f32.xlu1 %v623_v32 }
  0x96   : > { %v507_v23 = vpop.f32.mrf.mxu1 }
  0x97   : > { %v504_v31 = vpop.f32.mrf.mxu0 }
  0x9b   : > { %v1250_v33 = vpop.eup %1056 }
  0x9c   : > { %v626_v0 = vsel %vm610_vm0, %v1250_v33, 0.0 }
  0x9d   : > { %627 = vadd.xlane.f32.xlu1 %v626_v0 }
  0x9e   : > { %v527_v7 = vpop.f32.mrf.mxu1 }
  0x9f   : > { %v528_v32 = vadd.f32 %v527_v7, %v504_v31 }
  0xa6   : > { %v530_v27 = vpop.f32.mrf.mxu1 }
  0xa7   : > { %v531_v29 = vadd.f32 %v530_v27, %v507_v23 }
  0xa8   : > { %v594_v48 = vpop.xlane.xlu2 %593 }
  0xa9   : > { %v598_v50 = vadd.f32 %v594_v48, %v590_v49  ;;  %v534_v0 = vadd.f32 %v531_v29, %v486_v17 }
  0xab   : > { %601 = vst.msk [vmem:[#allocation4] sm:$0xff] %vm398_vm6, %v598_v50 }
  0xac   : > { %537 = vst.msk [vmem:[#allocation2 + $0x8] sm:$0xff] %vm393_vm5, %v534_v0 }
  0xb0   : > { %v597_v51 = vpop.xlane.xlu2 %596 }
  0xb1   : > { %v599_v53 = vadd.f32 %v597_v51, %v591_v52 }
  0xb2   : > { %v697_v56 = vld [vmem:[#allocation4] sm:$0xff] }
  0xb3   : > { %602 = vst.msk [vmem:[#allocation4 + $0x8] sm:$0xff] %vm398_vm6, %v599_v53  ;;  %701 = vperm.xlu2 %1028, %v697_v56  }
  0xba   : > { %v698_v62 = vld [vmem:[#allocation4 + $0x8] sm:$0xff] }
  0xbb   : > { %706 = vperm.xlu2 %1028, %v698_v62  }
  0xc0   : > { %v557_v35 = vpop.f32.mrf.mxu2 }
  0xc1   : > { %v580_v37 = vpop.f32.mrf.mxu3 }
  0xc2   : > { %v581_v38 = vadd.f32 %v580_v37, %v557_v35 }
  0xc4   : > { %v586_v39 = vadd.f32 %v581_v38, %v538_v36 }
  0xc6   : > { %588 = vst.msk [vmem:[#allocation3] sm:$0xff] %vm393_vm5, %v586_v39 }
  0xc8   : > { %v560_v40 = vpop.f32.mrf.mxu2 }
  0xc9   : > { %v583_v42 = vpop.f32.mrf.mxu3 }
  0xca   : > { %v584_v43 = vadd.f32 %v583_v42, %v560_v40 }
  0xcc   : > { %v587_v44 = vadd.f32 %v584_v43, %v539_v41 }
  0xcd   : > { %v1259_v45 = vld [vmem:[#allocation3] sm:$0xff] }
  0xce   : > { %589 = vst.msk [vmem:[#allocation3 + $0x8] sm:$0xff] %vm393_vm5, %v587_v44  ;;  %719 = vperm.xlu0 %1026, %v1259_v45   ;;  %v713_v39 = vmul.f32 2.0, %v1259_v45 }
  0xd0   : > { %v715_v44 = vadd.f32 1.0, %v713_v39 }
  0xd5   : > { %v1263_v46 = vld [vmem:[#allocation3 + $0x8] sm:$0xff] }
  0xd6   : > { %724 = vperm.xlu1 %1027, %v1263_v46   ;;  %v714_v45 = vmul.f32 2.0, %v1263_v46 }
 0x108   : > { %v625_v55 = vpop.xlane.xlu1 %624 }
 0x109   : > { %1058 = vrcp.f32 %v625_v55  ;;  %v640_v61 = vand.u32 2147483648, %v625_v55  ;;  %v638_v1 = vand.u32 2147483647, %v625_v55  ;;  %vm634_vm8 = vweird.f32 %v625_v55 }
 0x10b   : > { %v641_v4 = vor.u32 1.1754944e-38, %v640_v61  ;;  %vm639_vm10 = vcmp.eq.f32.partialorder %v638_v1, 8.507059e+37  ;;  %v694_v1 = vld [vmem:[#allocation2 + $0x8] sm:$0xff] }
 0x10f   : > { %v1059_v57 = vpop.eup %1058 }
 0x110   : > { %v630_v58 = vmul.f32 %v1059_v57, %v625_v55  ;;  %v628_v59 = vpop.xlane.xlu1 %627  ;;  %vm635_vm7 = vweird.f32 %v1059_v57 }
 0x111   : > { %1060 = vrcp.f32 %v628_v59  ;;  %vm636_vm9 = vmor %vm634_vm8, %vm635_vm7  ;;  %v655_v14 = vand.u32 2147483648, %v628_v59  ;;  %v653_v16 = vand.u32 2147483647, %v628_v59  ;;  %vm649_vm12 = vweird.f32 %v628_v59 }
 0x112   : > { %v631_v60 = vsub.f32 1.0, %v630_v58  ;;  %v716_v58 = vadd.f32 1.0, %v714_v45 }
 0x113   : > { %v656_v19 = vor.u32 1.1754944e-38, %v655_v14  ;;  %vm654_vm14 = vcmp.eq.f32.partialorder %v653_v16, 8.507059e+37 }
 0x114   : > { %v632_v63 = vmul.f32 %v1059_v57, %v631_v60 }
 0x116   : > { %v633_v2 = vadd.f32 %v1059_v57, %v632_v63  ;;  %v702_v63 = vpop.permute.xlu2 %701 }
 0x117   : > { %v1061_v3 = vpop.eup %1060 }
 0x118   : > { %v645_v5 = vmul.f32 %v1061_v3, %v628_v59  ;;  %v637_v9 = vsel %vm636_vm9, %v1059_v57, %v633_v2  ;;  %vm650_vm11 = vweird.f32 %v1061_v3 }
 0x119   : > { %v642_v10 = vsel %vm639_vm10, %v641_v4, %v637_v9  ;;  %vm651_vm13 = vmor %vm649_vm12, %vm650_vm11 }
 0x11a   : > { %v646_v11 = vsub.f32 1.0, %v645_v5  ;;  %v643_v12 = vmul.f32 %v1246_v30, %v642_v10  ;;  %v485_v30 = vld [vmem:[#allocation2] sm:$0xff] }
 0x11b   : > { %v533_v35 = vadd.f32 %v528_v32, %v485_v30 }
 0x11c   : > { %v647_v15 = vmul.f32 %v1061_v3, %v646_v11  ;;  %977 = vmatmul.msk.f32.vlgmr.msrb.gmra.mxu0 %vm610_vm0, %v643_v12 }
 0x11d   : > { %536 = vst.msk [vmem:[#allocation2] sm:$0xff] %vm393_vm5, %v533_v35  ;;  %vm766_vm5 = vcmask 64512  }
 0x11e   : > { %v648_v18 = vadd.f32 %v1061_v3, %v647_v15  ;;  %v707_v46 = vpop.permute.xlu2 %706 }
 0x11f   : > { %v710_v2 = vsub.f32 %v707_v46, %v694_v1 }
 0x120   : > { %v652_v20 = vsel %vm651_vm13, %v1061_v3, %v648_v18 }
 0x121   : > { %v657_v21 = vsel %vm654_vm14, %v656_v19, %v652_v20  ;;  %v712_v3 = vmul.f32 0.00390625, %v710_v2 }
 0x122   : > { %v658_v22 = vmul.f32 %v1250_v33, %v657_v21 }
 0x123   : > { %768 = vst.msk [vmem:[%s383_s9 + $0x8] sm:$0xff] %vm766_vm5, %v712_v3  ;;  %v772_v21 = vmul.f32 5.0, %v712_v3 }
 0x124   : > { %978 = vmatmul.msk.f32.gmra.mxu0 %vm610_vm0, %v658_v22  ;;  %v693_v4 = vld [vmem:[#allocation2] sm:$0xff] }
 0x125   : > { %v709_v5 = vsub.f32 %v702_v63, %v693_v4 }
 0x127   : > { %v711_v9 = vmul.f32 0.00390625, %v709_v5 }
 0x129   : > { %767 = vst.msk [vmem:[%s383_s9] sm:$0xff] %vm766_vm5, %v711_v9  ;;  %v771_v12 = vmul.f32 5.0, %v711_v9 }
 0x140   : > { %v720_v6 = vpop.permute.xlu0 %719 }
 0x141   : > { %v730_v25 = vadd.f32 %v1029_v24, %v720_v6 }
 0x143   : > { %v732_v8 = vadd.f32 1.0, %v730_v25 }
 0x145   : > { %1062 = vrcp.f32 %v732_v8  ;;  %v745_v36 = vand.u32 2147483648, %v732_v8  ;;  %vm739_vm15 = vweird.f32 %v732_v8  ;;  %v743_v38 = vand.u32 2147483647, %v732_v8 }
 0x147   : > { %v746_v41 = vor.u32 1.1754944e-38, %v745_v36  ;;  %vm744_vm2 = vcmp.eq.f32.partialorder %v743_v38, 8.507059e+37 }
 0x148   : > { %v725_v26 = vpop.permute.xlu1 %724 }
 0x149   : > { %v731_v28 = vadd.f32 %v1029_v24, %v725_v26 }
 0x14b   : > { %v1063_v33 = vpop.eup %1062  ;;  %v733_v34 = vadd.f32 1.0, %v731_v28 }
 0x14c   : > { %v735_v13 = vmul.f32 %v1063_v33, %v732_v8  ;;  %vm740_vm0 = vweird.f32 %v1063_v33 }
 0x14d   : > { %1064 = vrcp.f32 %v733_v34  ;;  %vm741_vm1 = vmor %vm739_vm15, %vm740_vm0  ;;  %vm754_vm3 = vweird.f32 %v733_v34  ;;  %v760_v49 = vand.u32 2147483648, %v733_v34  ;;  %v758_v53 = vand.u32 2147483647, %v733_v34 }
 0x14e   : > { %v736_v37 = vsub.f32 1.0, %v735_v13 }
 0x14f   : > { %v761_v56 = vor.u32 1.1754944e-38, %v760_v49  ;;  %vm759_vm7 = vcmp.eq.f32.partialorder %v758_v53, 8.507059e+37 }
 0x150   : > { %v737_v40 = vmul.f32 %v1063_v33, %v736_v37 }
 0x152   : > { %v738_v42 = vadd.f32 %v1063_v33, %v737_v40 }
 0x153   : > { %v1065_v43 = vpop.eup %1064 }
 0x154   : > { %v750_v47 = vmul.f32 %v1065_v43, %v733_v34  ;;  %v742_v48 = vsel %vm741_vm1, %v1063_v33, %v738_v42  ;;  %vm755_vm4 = vweird.f32 %v1065_v43 }
 0x155   : > { %v747_v50 = vsel %vm744_vm2, %v746_v41, %v742_v48  ;;  %vm756_vm6 = vmor %vm754_vm3, %vm755_vm4 }
 0x156   : > { %v751_v51 = vsub.f32 1.0, %v750_v47  ;;  %v748_v52 = vmul.f32 %v747_v50, %v715_v44 }
 0x158   : > { %v752_v54 = vmul.f32 %v1065_v43, %v751_v51  ;;  %v764_v55 = vsub.f32 1.0, %v748_v52 }
 0x15a   : > { %769 = vst.msk [vmem:[%s388_s29] sm:$0xff] %vm766_vm5, %v764_v55  ;;  %v753_v57 = vadd.f32 %v1065_v43, %v752_v54  ;;  %v777_v16 = vmul.f32 5.0, %v764_v55 }
 0x15c   : > { %v757_v59 = vsel %vm756_vm6, %v1065_v43, %v753_v57 }
 0x15d   : > { %v762_v60 = vsel %vm759_vm7, %v761_v56, %v757_v59 }
 0x15e   : > { %v763_v61 = vmul.f32 %v762_v60, %v716_v58 }
 0x160   : > { %v765_v62 = vsub.f32 1.0, %v763_v61 }
 0x162   : > { %770 = vst.msk [vmem:[%s388_s29 + $0x8] sm:$0xff] %vm766_vm5, %v765_v62  ;;  %v778_v24 = vmul.f32 5.0, %v765_v62 }
 0x199   : > { %v685_v10 = vpop.f32.mrf.mxu0 }
 0x19a   : > { %v691_v11 = vsub.f32 0.0, %v685_v10 }
 0x19c   : > { %v773_v14 = vmul.f32 2.0, %v691_v11 }
 0x19e   : > { %v775_v15 = vadd.f32 %v773_v14, %v771_v12 }
 0x1a0   : > { %v779_v18 = vadd.f32 %v777_v16, %v775_v15 }
 0x1a1   : > { %v688_v19 = vpop.f32.mrf.mxu0 }
 0x1a2   : > { %781 = vst.msk [vmem:[%s378_s13] sm:$0xff] %vm766_vm5, %v779_v18  ;;  %v692_v20 = vsub.f32 0.0, %v688_v19 }
 0x1a4   : > { %v774_v22 = vmul.f32 2.0, %v692_v20 }
 0x1a6   : > { %v776_v23 = vadd.f32 %v774_v22, %v772_v21 }
 0x1a8   : > { %v780_v6 = vadd.f32 %v778_v24, %v776_v23 }
 0x1aa   : > { %782 = vst.msk [vmem:[%s378_s13 + $0x8] sm:$0xff] %vm766_vm5, %v780_v6 }
 0x1ab PF: > { %s19_s26 = sadd.s32 1, %s1122_s26   ;;  %s1315_s24 = smov %s1118_s25 }
 0x1ac   : > { %p16_p8 = scmp.ge.s32.totalorder %s19_s26, 5   ;;  %s1316_s25 = smov %s1318_s28 }
 0x1ae   :  { %18 = sbr.rel (!%p16_p8) target bundleno = 2 (0x2), region = 113 }
 0x1b3   :  { %836 = vsyncpa [#allocation6], 1 }
 0x1b4   :  { %838 = vsyncpa [#allocation6 + $0x1], 1 }

</bundles_post_ra>
